<compile_context>
chip_gen: v7x
topology: tpu7x:2x2x1
jax: 0.10.0
libtpu: 0.0.40
codegen_flags: <defaults>
</compile_context>

<pallas_src>
import functools

import jax
import jax.numpy as jnp
from jax.experimental import pallas as pl
from jax.experimental.pallas import tpu as pltpu


def _layernorm_kernel(x_ref, g_ref, b_ref, o_ref, *, eps, inv_n, inv_nm1,
                      use_mxu_reductions):
    # x_ref: (TN, D) block of TN full samples; g_ref/b_ref: (1, D) f32 affine.
    x = x_ref[...].astype(jnp.float32)
    g = g_ref[...]                      # already f32 (cast once in the wrapper)
    b = b_ref[...]

    if use_mxu_reductions:
        # v7x option (VALU-bound at 3.2 TB/s): push the two row reductions onto
        # the otherwise-idle MXU.  HIGHEST precision keeps the f32 sums within
        # the 1e-4 tolerance.  Enable only after a bundle dump confirms the
        # VALU/XLU slot is the binding unit (neutral-to-negative on v5e).
        ones = jnp.ones((x.shape[-1], 1), dtype=jnp.float32)
        row_sum = jnp.dot(x, ones, preferred_element_type=jnp.float32,
                          precision=jax.lax.Precision.HIGHEST)
        mean = row_sum * inv_n                                   # (TN, 1)
        diff = x - mean
        sq_sum = jnp.dot(diff * diff, ones, preferred_element_type=jnp.float32,
                         precision=jax.lax.Precision.HIGHEST)
        var = sq_sum * inv_nm1
    else:
        # Two-pass stats on the XLU lane-reduce path (numerically safe vs. the
        # one-pass sum/sumsq formulation, which is gated on measurement).
        mean = jnp.sum(x, axis=-1, keepdims=True) * inv_n        # (TN, 1)
        diff = x - mean
        var = jnp.sum(diff * diff, axis=-1, keepdims=True) * inv_nm1

    # Exact EUP reciprocal (approx=True risks the 1e-4 tolerance), then a fused
    # normalize + affine with the row-broadcast multiply landing on `diff`
    # first — no extra (TN, D) temp is materialized.
    inv = pl.reciprocal(jnp.sqrt(var) + eps, approx=False)       # (TN, 1)
    o_ref[...] = ((diff * inv) * g + b).astype(o_ref.dtype)


def _round_down(x, m):
    return (x // m) * m


def _round_up(x, m):
    return ((x + m - 1) // m) * m


def _vmem_capacity_bytes():
    try:
        return int(pltpu.get_tpu_info().vmem_capacity_bytes)
    except Exception:
        return 64 * 1024 * 1024  # conservative fallback (v7x-sized)


def _choose_block_rows(N, D, dtype, vmem_cap):
    """Pick TN (rows per block) with a per-chip VMEM budget.

    Budget per grid step (per row):
      2x double-buffered input + 2x double-buffered output (native dtype)
      + ~3 f32-sized temporaries inside the body (x upcast, diff, fused store).
    """
    itemsize = jnp.dtype(dtype).itemsize
    sub = max(8, 32 // itemsize)           # sublane pack: 8 f32 / 16 bf16 / 32 int8

    big_vmem = vmem_cap >= 128 * 1024 * 1024
    target_block = (8 if big_vmem else 4) * 1024 * 1024
    budget = int(vmem_cap * (0.70 if big_vmem else 0.60))

    row_bytes = 4 * D * itemsize + 3 * D * 4
    tn_cap = max(1, budget // row_bytes)

    tn = max(1, target_block // max(1, D * itemsize))
    tn = min(tn, tn_cap)

    if N < 2 * sub:
        # Cannot form >= 2 sublane-aligned row blocks: take the whole batch in
        # one block (block dims == full array dims is always legal).
        return N

    # Keep the grid at >= ~8 steps so DMA/compute overlap and megacore sharding
    # have work to distribute (a 1-step grid idles the second v7x TensorCore).
    tn = min(tn, _round_up(pl.cdiv(N, 8), sub))

    # Tiling the batch axis: align to the dtype's sublane packing (and the
    # hard (8, 128) block constraint).
    tn = max(sub, _round_down(tn, sub))
    if tn >= N:
        return N
    return tn


def layer_norm(x, gamma, beta, eps=1e-5, block_rows=None,
               use_mxu_reductions=False, input_buffers=None):
    """x: (N, C, H, W) float array; gamma, beta: (C,)."""
    N, C, H, W = x.shape
    HW = H * W
    D = C * HW
    assert D > 1, "unbiased std needs at least 2 elements per sample"

    # Lane-dense layout: each row is one sample, channel-major (NCHW flatten).
    x2 = x.reshape(N, D)
    g2 = jnp.repeat(gamma.astype(jnp.float32), HW).reshape(1, D)
    b2 = jnp.repeat(beta.astype(jnp.float32), HW).reshape(1, D)

    vmem_cap = _vmem_capacity_bytes()
    tn = block_rows if block_rows is not None else _choose_block_rows(
        N, D, x.dtype, vmem_cap)
    tn = max(1, min(tn, N))
    grid = (pl.cdiv(N, tn),)

    # 96 MiB on 128 MiB parts (v5e/v6e), 48 MiB on 64 MiB parts (v7x).
    vmem_limit = int(min(vmem_cap - 8 * 1024 * 1024, vmem_cap * 0.75))

    kernel = functools.partial(
        _layernorm_kernel,
        eps=float(eps),
        inv_n=1.0 / D,
        inv_nm1=1.0 / (D - 1),
        use_mxu_reductions=use_mxu_reductions,
    )

    # Optional deeper input pipelining (v5e: only if a trace shows exposed DMA).
    if input_buffers is not None and input_buffers != 2:
        x_spec = pl.BlockSpec((tn, D), lambda i: (i, 0),
                              pipeline_mode=pl.Buffered(input_buffers))
    else:
        x_spec = pl.BlockSpec((tn, D), lambda i: (i, 0))

    out = pl.pallas_call(
        kernel,
        out_shape=jax.ShapeDtypeStruct((N, D), x.dtype),
        grid_spec=pltpu.PrefetchScalarGridSpec(
            num_scalar_prefetch=0,
            grid=grid,
            in_specs=[
                x_spec,
                pl.BlockSpec((1, D), lambda i: (0, 0)),
                pl.BlockSpec((1, D), lambda i: (0, 0)),
            ],
            out_specs=pl.BlockSpec((tn, D), lambda i: (i, 0)),
        ),
        compiler_params=pltpu.CompilerParams(
            dimension_semantics=("parallel",),
            vmem_limit_bytes=vmem_limit,
        ),
    )(x2, g2, b2)

    return out.reshape(N, C, H, W)


def layer_norm_ref(x, gamma, beta, eps=1e-5):
    """Pure-JAX reference mirroring the PyTorch forward exactly."""
    N = x.shape[0]
    flat = x.reshape(N, -1).astype(jnp.float32)
    mean = flat.mean(axis=1).reshape(N, 1, 1, 1)
    std = jnp.sqrt(
        jnp.sum((flat - flat.mean(axis=1, keepdims=True)) ** 2, axis=1)
        / (flat.shape[1] - 1)
    ).reshape(N, 1, 1, 1)
    y = (x.astype(jnp.float32) - mean) / (std + eps)
    y = y * gamma.reshape(1, -1, 1, 1) + beta.reshape(1, -1, 1, 1)
    return y.astype(x.dtype)


if __name__ == "__main__":
    key = jax.random.PRNGKey(0)
    k_x, k_g = jax.random.split(key)

    N, C, H, W = 2, 4, 16, 16
    x = jax.random.normal(k_x, (N, C, H, W), dtype=jnp.float32)
    # Deterministic parameter init matching the module's __init__ shapes:
    #   gamma ~ U[0, 1)  (torch .uniform_()),  beta = zeros
    gamma = jax.random.uniform(k_g, (C,), dtype=jnp.float32)
    beta = jnp.zeros((C,), dtype=jnp.float32)

    out = layer_norm(x, gamma, beta, eps=1e-5)
    out = jax.block_until_ready(out)

    ref = layer_norm_ref(x, gamma, beta, eps=1e-5)
    assert out.shape == (N, C, H, W)
    assert jnp.max(jnp.abs(out - ref)) < 1e-4, "mismatch vs reference"

    # Also exercise a non-divisible, tiled batch (padded tail rows are masked
    # on store, so only wasted work — verify correctness explicitly).
    N2 = 20
    x2 = jax.random.normal(k_x, (N2, C, H, W), dtype=jnp.float32)
    out2 = jax.block_until_ready(layer_norm(x2, gamma, beta, eps=1e-5, block_rows=8))
    ref2 = layer_norm_ref(x2, gamma, beta, eps=1e-5)
    assert jnp.max(jnp.abs(out2 - ref2)) < 1e-4, "mismatch vs reference (tiled)"

    print("KERNEL_OK")
</pallas_src>

<mosaic_0001>
module attributes {stable_mosaic.version = 11 : i64} {
  func.func @_layernorm_kernel(%arg0: i32, %arg1: memref<2x1024xf32, #tpu.memory_space<vmem>>, %arg2: memref<1x1024xf32, #tpu.memory_space<vmem>>, %arg3: memref<1x1024xf32, #tpu.memory_space<vmem>>, %arg4: memref<2x1024xf32, #tpu.memory_space<vmem>>) attributes {dimension_semantics = [#tpu.dimension_semantics<parallel>], iteration_bounds = array<i64: 1>, scalar_prefetch = 0 : i64, scratch_operands = 0 : i64, tpu.core_type = #tpu.core_type<tc>, window_params = [{transform_indices = @transform_0, window_bounds = array<i64: 2, 1024>}, {pipeline_mode = #tpu.pipeline_mode<synchronous>, transform_indices = @transform_1, window_bounds = array<i64: 1, 1024>}, {pipeline_mode = #tpu.pipeline_mode<synchronous>, transform_indices = @transform_2, window_bounds = array<i64: 1, 1024>}, {transform_indices = @transform_3, window_bounds = array<i64: 2, 1024>}]} {
    %c0 = arith.constant 0 : index
    %c0_0 = arith.constant 0 : index
    %0 = vector.load %arg1[%c0, %c0_0] : memref<2x1024xf32, #tpu.memory_space<vmem>>, vector<2x1024xf32>
    %c0_1 = arith.constant 0 : index
    %c0_2 = arith.constant 0 : index
    %1 = vector.load %arg2[%c0_1, %c0_2] : memref<1x1024xf32, #tpu.memory_space<vmem>>, vector<1x1024xf32>
    %c0_3 = arith.constant 0 : index
    %c0_4 = arith.constant 0 : index
    %2 = vector.load %arg3[%c0_3, %c0_4] : memref<1x1024xf32, #tpu.memory_space<vmem>>, vector<1x1024xf32>
    %cst = arith.constant dense<0.000000e+00> : vector<2xf32>
    %3 = vector.multi_reduction <add>, %0, %cst [1] : vector<2x1024xf32> to vector<2xf32>
    %4 = vector.shape_cast %3 : vector<2xf32> to vector<2x1xf32>
    %cst_5 = arith.constant 9.765625E-4 : f32
    %5 = vector.broadcast %cst_5 : f32 to vector<2x1xf32>
    %6 = arith.mulf %4, %5 : vector<2x1xf32>
    %7 = vector.broadcast %6 : vector<2x1xf32> to vector<2x1024xf32>
    %8 = arith.subf %0, %7 : vector<2x1024xf32>
    %9 = arith.mulf %8, %8 : vector<2x1024xf32>
    %cst_6 = arith.constant dense<0.000000e+00> : vector<2xf32>
    %10 = vector.multi_reduction <add>, %9, %cst_6 [1] : vector<2x1024xf32> to vector<2xf32>
    %11 = vector.shape_cast %10 : vector<2xf32> to vector<2x1xf32>
    %cst_7 = arith.constant 9.77517105E-4 : f32
    %12 = vector.broadcast %cst_7 : f32 to vector<2x1xf32>
    %13 = arith.mulf %11, %12 : vector<2x1xf32>
    %14 = math.sqrt %13 : vector<2x1xf32>
    %cst_8 = arith.constant 9.99999974E-6 : f32
    %15 = vector.broadcast %cst_8 : f32 to vector<2x1xf32>
    %16 = arith.addf %14, %15 : vector<2x1xf32>
    %17 = tpu.reciprocal %16 : vector<2x1xf32> -> vector<2x1xf32>
    %18 = vector.broadcast %17 : vector<2x1xf32> to vector<2x1024xf32>
    %19 = arith.mulf %8, %18 : vector<2x1024xf32>
    %20 = vector.broadcast %1 : vector<1x1024xf32> to vector<2x1024xf32>
    %21 = arith.mulf %19, %20 : vector<2x1024xf32>
    %22 = vector.broadcast %2 : vector<1x1024xf32> to vector<2x1024xf32>
    %23 = arith.addf %21, %22 : vector<2x1024xf32>
    %c0_9 = arith.constant 0 : index
    %c0_10 = arith.constant 0 : index
    %24 = vector.load %arg4[%c0_9, %c0_10] : memref<2x1024xf32, #tpu.memory_space<vmem>>, vector<2x1024xf32>
    tpu.vector_store %arg4[%c0_9, %c0_10], %23 {strides = array<i32>} : memref<2x1024xf32, #tpu.memory_space<vmem>>, vector<2x1024xf32>,
    return
  }
  func.func @transform_0(%arg0: i32) -> (i32, i32) {
    %c0_i32 = arith.constant 0 : i32
    %c0_i32_0 = arith.constant 0 : i32
    return %arg0, %c0_i32 : i32, i32
  }
  func.func @transform_1(%arg0: i32) -> (i32, i32) {
    %c0_i32 = arith.constant 0 : i32
    %c0_i32_0 = arith.constant 0 : i32
    %c0_i32_1 = arith.constant 0 : i32
    return %c0_i32, %c0_i32_0 : i32, i32
  }
  func.func @transform_2(%arg0: i32) -> (i32, i32) {
    %c0_i32 = arith.constant 0 : i32
    %c0_i32_0 = arith.constant 0 : i32
    %c0_i32_1 = arith.constant 0 : i32
    return %c0_i32, %c0_i32_0 : i32, i32
  }
  func.func @transform_3(%arg0: i32) -> (i32, i32) {
    %c0_i32 = arith.constant 0 : i32
    %c0_i32_0 = arith.constant 0 : i32
    return %arg0, %c0_i32 : i32, i32
  }
}

</mosaic_0001>

<bundles_post_ra>
// kernel: tpu_custom_call.1
= control target key start
LH: loop header
LB: loop body
LE: loop exit
PB: predicated region body
PF: predicated region fallthrough
CT: control target
= control target key end

     0   :  { %8 = vsyncpa [#allocation3], 0  ;;  %s612_s0 = inlined_call_operand.hbm [shape: f32[2,1024], index: 0, kind: input, shape index: {}]   ;;  %s613_s1 = inlined_call_operand.hbm [shape: f32[1,1024], index: 1, kind: input, shape index: {}]   ;;  %s614_s2 = inlined_call_operand.hbm [shape: f32[1,1024], index: 2, kind: input, shape index: {}]   ;;  %s615_s3 = inlined_call_operand.hbm [shape: f32[2,1024], index: 3, kind: output, shape index: {}]  }
   0x1   :  { %9 = vsyncpa [#allocation6], 0 }
   0x2   :  { %10 = vsyncpa [#allocation4], 0  ;;  %s478_s12 = smov [#allocation5]   ;;  %s479_s14 = smov [#allocation2]  }
   0x3   :  { %s27_s13 = sshll.u32 %s478_s12, 4  ;;  %s17_s15 = sshll.u32 %s479_s14, 4  ;;  %s28_s13 = int_to_ptr.vmem [resolvable:$true] %s27_s13  ;;  %s18_s15 = int_to_ptr.vmem [resolvable:$true] %s17_s15 }
   0x4   :  { %s384_s18 = scalar_lea.hbm %s613_s1, 128 }
   0x5   :  { %p385_p0 = scmp.ne.s32.totalorder %s613_s1, %s384_s18  ;;  %p388_p1 = scmp.lt.u32.totalorder %s384_s18, %s613_s1 }
   0x7   :  { %p390_p2 = pnand %p388_p1, %p385_p0 }
   0x9   :  { %393 = shalt.err (!%p390_p2)
}
   0xa   :  { %s394_s23 = scalar_lea.vmem %s28_s13, 128  ;;  %p399_p4 = scmp.lt.s32.totalorder %s28_s13, %s28_s13 }
   0xb   :  { %p395_p3 = scmp.ne.s32.totalorder %s28_s13, %s394_s23  ;;  %p400_p5 = scmp.lt.s32.totalorder %s394_s23, %s394_s23 }
   0xd   :  { %p401_p6 = por %p400_p5, %p399_p4 }
   0xf   :  { %p402_p7 = pnand %p401_p6, %p395_p3 }
  0x11   :  { %405 = shalt.err (!%p402_p7)
}
  0x12   :  { %30 = dma.hbm_to_vmem [thread:$0]  %s613_s1, 128, %s28_s13, [#allocation6]  }
  0x13   :  { %s406_s28 = scalar_lea.hbm %s612_s0, 256 }
  0x14   :  { %p407_p8 = scmp.ne.s32.totalorder %s612_s0, %s406_s28  ;;  %p410_p9 = scmp.lt.u32.totalorder %s406_s28, %s612_s0 }
  0x16   :  { %p412_p10 = pnand %p410_p9, %p407_p8 }
  0x18   :  { %415 = shalt.err (!%p412_p10)
}
  0x19   :  { %s416_s6 = scalar_lea.vmem %s18_s15, 256  ;;  %p421_p12 = scmp.lt.s32.totalorder %s18_s15, %s18_s15 }
  0x1a   :  { %p417_p11 = scmp.ne.s32.totalorder %s18_s15, %s416_s6  ;;  %p422_p13 = scmp.lt.s32.totalorder %s416_s6, %s416_s6 }
  0x1c   :  { %p423_p0 = por %p422_p13, %p421_p12 }
  0x1e   :  { %p424_p1 = pnand %p423_p0, %p417_p11 }
  0x20   :  { %427 = shalt.err (!%p424_p1)
}
  0x21   :  { %20 = dma.hbm_to_vmem [thread:$0]  %s612_s0, 256, %s18_s15, [#allocation3]  }
  0x22   :  { %s480_s8 = smov [#allocation7]   ;;  %s428_s12 = scalar_lea.hbm %s614_s2, 128 }
  0x23   :  { %s37_s9 = sshll.u32 %s480_s8, 4  ;;  %p429_p2 = scmp.ne.s32.totalorder %s614_s2, %s428_s12  ;;  %s38_s9 = int_to_ptr.vmem [resolvable:$true] %s37_s9 }
  0x24   :  { %p432_p3 = scmp.lt.u32.totalorder %s428_s12, %s614_s2 }
  0x26   :  { %p434_p4 = pnand %p432_p3, %p429_p2 }
  0x28   :  { %437 = shalt.err (!%p434_p4)
}
  0x29   :  { %s438_s18 = scalar_lea.vmem %s38_s9, 128  ;;  %p443_p6 = scmp.lt.s32.totalorder %s38_s9, %s38_s9 }
  0x2a   :  { %p439_p5 = scmp.ne.s32.totalorder %s38_s9, %s438_s18  ;;  %p444_p7 = scmp.lt.s32.totalorder %s438_s18, %s438_s18 }
  0x2c   :  { %p445_p8 = por %p444_p7, %p443_p6 }
  0x2e   :  { %p446_p9 = pnand %p445_p8, %p439_p5 }
  0x30   :  { %449 = shalt.err (!%p446_p9)
}
  0x31   :  { %40 = dma.hbm_to_vmem [thread:$0]  %s614_s2, 128, %s38_s9, [#allocation6]  }
  0x32   :  { %472 = dma.done.wait [#allocation3], 256  }
  0x33   :  { %473 = vsyncadd [#allocation3], 4294967040 }
  0x34   :  { %474 = dma.done.wait [#allocation6], 256  }
  0x35   :  { %475 = vsyncadd [#allocation6], 4294967040  ;;  %v60_v0 = vlaneseq  ;;  %v481_v1 = vmov 1983009808   ;;  %v50_v6 = vld [vmem:[#allocation2] sm:$0xff]  ;;  %v51_v7 = vld [vmem:[#allocation2 + $0x8] sm:$0xff] }
  0x36   :  { %v58_v2 = vunpack.c.l.s4 %v481_v1  ;;  %v56_v8 = vcombine.high %v50_v6, %v50_v6  ;;  %vm98_vm0 = vcmask 1041408   ;;  %v73_v12 = vcombine.high %v51_v7, %v51_v7  ;;  %s483_s2 = smov [#allocation8]  }
  0x37   :  { %v540_v3 = vshrl.u32 %v60_v0, 7  ;;  %v482_v33 = vmov 269488144   ;;  %s362_s19 = sshll.u32 %s483_s2, 4  ;;  %s363_s19 = int_to_ptr.vmem [resolvable:$true] %s362_s19 }
  0x38   :  { %v59_v4 = vunpack.c.0.s8 %v58_v2  ;;  %v119_v34 = vunpack.c.l.s4 %v482_v33  ;;  %s450_s20 = scalar_lea.vmem %s363_s19, 256  ;;  %p455_p11 = scmp.lt.s32.totalorder %s363_s19, %s363_s19 }
  0x39   :  { %p451_p10 = scmp.ne.s32.totalorder %s363_s19, %s450_s20  ;;  %p456_p12 = scmp.lt.s32.totalorder %s450_s20, %s450_s20 }
  0x3a   :  { %v543_v5 = vsub.s32 %v59_v4, %v540_v3  ;;  %v120_v35 = vunpack.c.0.s8 %v119_v34 }
  0x3b   :  { %p457_p13 = por %p456_p12, %p455_p11 }
  0x3c   :  { %v63_v9 = vrot.slane %v50_v6, %v543_v5  ;;  %v70_v10 = vrot.slane %v56_v8, %v543_v5  ;;  %v80_v13 = vrot.slane %v51_v7, %v543_v5  ;;  %v87_v19 = vrot.slane %v73_v12, %v543_v5 }
  0x3d   :  { %v558_v36 = vsub.s32 %v120_v35, %v540_v3  ;;  %v223_v12 = vsub.s32 2, %v540_v3  ;;  %p458_p0 = pnand %p457_p13, %p451_p10 }
  0x3e   :  { %v71_v11 = vcombine.high %v63_v9, %v63_v9  ;;  %v99_v14 = vsel %vm98_vm0, %v63_v9, 0.0  ;;  %v72_v15 = vcombine.high %v70_v10, %v70_v10  ;;  %v102_v17 = vsel %vm98_vm0, %v70_v10, 0.0 }
  0x3f   :  { %v88_v20 = vcombine.high %v80_v13, %v80_v13  ;;  %v106_v23 = vsel %vm98_vm0, %v80_v13, 0.0  ;;  %v89_v25 = vcombine.high %v87_v19, %v87_v19  ;;  %v110_v28 = vsel %vm98_vm0, %v87_v19, 0.0 }
  0x40   :  { %v100_v16 = vsel %vm98_vm0, %v71_v11, 0.0  ;;  %v104_v21 = vsel %vm98_vm0, %v72_v15, 0.0  ;;  %v215_v10 = vsub.s32 0, %v540_v3  ;;  %v219_v11 = vsub.s32 1, %v540_v3 }
  0x41   :  { %v101_v18 = vadd.f32 %v100_v16, %v99_v14  ;;  %v108_v26 = vsel %vm98_vm0, %v88_v20, 0.0  ;;  %v112_v30 = vsel %vm98_vm0, %v89_v25, 0.0  ;;  %v52_v14 = vld [vmem:[#allocation5] sm:$0xff]  ;;  %v227_v15 = vsub.s32 3, %v540_v3 }
  0x42   :  { %v231_v16 = vsub.s32 4, %v540_v3  ;;  %v239_v19 = vsub.s32 6, %v540_v3  ;;  %v243_v20 = vsub.s32 7, %v540_v3  ;;  %v220_v25 = vrot.slane %v52_v14, %v219_v11 }
  0x43   :  { %v103_v22 = vadd.f32 %v102_v17, %v101_v18  ;;  %v235_v17 = vsub.s32 5, %v540_v3 }
  0x45   :  { %v105_v24 = vadd.f32 %v104_v21, %v103_v22  ;;  %v53_v22 = vld [vmem:[#allocation7] sm:$0xff] }
  0x46   :  { %v287_v33 = vrot.slane %v53_v22, %v215_v10  ;;  %v291_v34 = vrot.slane %v53_v22, %v219_v11  ;;  %v295_v35 = vrot.slane %v53_v22, %v223_v12  ;;  %v307_v3 = vrot.slane %v53_v22, %v235_v17 }
  0x47   :  { %v107_v27 = vadd.f32 %v106_v23, %v105_v24  ;;  %v216_v24 = vrot.slane %v52_v14, %v215_v10 }
  0x49   :  { %v109_v29 = vadd.f32 %v108_v26, %v107_v27  ;;  %v224_v27 = vrot.slane %v52_v14, %v223_v12 }
  0x4b   :  { %v111_v31 = vadd.f32 %v110_v28, %v109_v29  ;;  %v228_v28 = vrot.slane %v52_v14, %v227_v15  ;;  %v232_v29 = vrot.slane %v52_v14, %v231_v16 }
  0x4d   :  { %v113_v32 = vadd.f32 %v112_v30, %v111_v31  ;;  %v236_v30 = vrot.slane %v52_v14, %v235_v17  ;;  %v240_v31 = vrot.slane %v52_v14, %v239_v19 }
  0x4f   :  { %114 = vadd.xlane.f32.xlu0 %v113_v32  ;;  %v244_v32 = vrot.slane %v52_v14, %v243_v20 }
  0xdc   :  { %v115_v37 = vpop.xlane.xlu0 %114 }
  0xdd   :  { %v116_v38 = vmul.f32 0.0009765625, %v115_v37  ;;  %v299_v37 = vrot.slane %v53_v22, %v227_v15 }
  0xdf   :  { %v124_v39 = vrot.slane %v116_v38, %v558_v36  ;;  %v303_v38 = vrot.slane %v53_v22, %v231_v16 }
  0xe1   :  { %v561_v40 = vsub.f32 %v50_v6, %v124_v39  ;;  %v563_v41 = vsub.f32 %v51_v7, %v124_v39  ;;  %v311_v39 = vrot.slane %v53_v22, %v239_v19 }
  0xe3   :  { %v128_v42 = vmul.f32 %v561_v40, %v561_v40  ;;  %v129_v43 = vmul.f32 %v563_v41, %v563_v41 }
  0xe5   :  { %v132_v44 = vcombine.high %v128_v42, %v128_v42  ;;  %v139_v45 = vrot.slane %v128_v42, %v543_v5  ;;  %v156_v48 = vrot.slane %v129_v43, %v543_v5  ;;  %v149_v52 = vcombine.high %v129_v43, %v129_v43 }
  0xe6   :  { %v315_v42 = vrot.slane %v53_v22, %v243_v20  ;;  %v245_v43 = vcombine.low %v216_v24, %v220_v25 }
  0xe7   :  { %v146_v46 = vrot.slane %v132_v44, %v543_v5  ;;  %v147_v47 = vcombine.high %v139_v45, %v139_v45  ;;  %v174_v49 = vsel %vm98_vm0, %v139_v45, 0.0  ;;  %v163_v56 = vrot.slane %v149_v52, %v543_v5 }
  0xe8   :  { %v164_v57 = vcombine.high %v156_v48, %v156_v48  ;;  %v181_v60 = vsel %vm98_vm0, %v156_v48, 0.0  ;;  %v246_v44 = vcombine.low %v224_v27, %v228_v28  ;;  %v262_v45 = vcombine.low %v232_v29, %v236_v30 }
  0xe9   :  { %v175_v50 = vsel %vm98_vm0, %v147_v47, 0.0  ;;  %v148_v51 = vcombine.high %v146_v46, %v146_v46  ;;  %v177_v54 = vsel %vm98_vm0, %v146_v46, 0.0  ;;  %v165_v62 = vcombine.high %v163_v56, %v163_v56 }
  0xea   :  { %v176_v53 = vadd.f32 %v175_v50, %v174_v49  ;;  %v183_v63 = vsel %vm98_vm0, %v164_v57, 0.0  ;;  %v185_v1 = vsel %vm98_vm0, %v163_v56, 0.0  ;;  %v263_v46 = vcombine.low %v240_v31, %v244_v32 }
  0xeb   :  { %v179_v58 = vsel %vm98_vm0, %v148_v51, 0.0  ;;  %v187_v4 = vsel %vm98_vm0, %v165_v62, 0.0  ;;  %v316_v47 = vcombine.low %v287_v33, %v291_v34  ;;  %v317_v48 = vcombine.low %v295_v35, %v299_v37 }
  0xec   :  { %v178_v55 = vadd.f32 %v177_v54, %v176_v53  ;;  %v333_v49 = vcombine.low %v303_v38, %v307_v3  ;;  %v334_v50 = vcombine.low %v311_v39, %v315_v42  ;;  %v253_v51 = vrot.slane %v245_v43, %v543_v5 }
  0xed   :  { %v260_v52 = vrot.slane %v246_v44, %v543_v5  ;;  %v270_v53 = vrot.slane %v262_v45, %v543_v5  ;;  %v277_v54 = vrot.slane %v263_v46, %v543_v5  ;;  %v331_v56 = vrot.slane %v317_v48, %v543_v5 }
  0xee   :  { %v180_v59 = vadd.f32 %v179_v58, %v178_v55  ;;  %v324_v55 = vrot.slane %v316_v47, %v543_v5  ;;  %v341_v57 = vrot.slane %v333_v49, %v543_v5  ;;  %v348_v58 = vrot.slane %v334_v50, %v543_v5 }
  0xef   :  { %v278_v62 = vcombine.low %v270_v53, %v277_v54 }
  0xf0   :  { %v182_v61 = vadd.f32 %v181_v60, %v180_v59 }
  0xf2   :  { %v184_v0 = vadd.f32 %v183_v63, %v182_v61  ;;  %v261_v61 = vcombine.low %v253_v51, %v260_v52 }
  0xf4   :  { %v186_v2 = vadd.f32 %v185_v1, %v184_v0  ;;  %v332_v1 = vcombine.low %v324_v55, %v331_v56 }
  0xf6   :  { %v188_v6 = vadd.f32 %v187_v4, %v186_v2  ;;  %v349_v2 = vcombine.low %v341_v57, %v348_v58 }
  0xf8   :  { %189 = vadd.xlane.f32.xlu0 %v188_v6 }
 0x185   :  { %v190_v7 = vpop.xlane.xlu0 %189 }
 0x186   :  { %v191_v8 = vmul.f32 0.0009775171, %v190_v7 }
 0x188   :  { %380 = vrsqrt.f32 %v191_v8  ;;  %vm194_vm1 = vcmp.eq.f32.partialorder %v191_v8, inf  ;;  %v197_v18 = vand.u32 2147483648, %v191_v8  ;;  %vm196_vm2 = vcmp.eq.f32.partialorder %v191_v8, 0.0 }
 0x192   :  { %v381_v9 = vpop.eup %380 }
 0x193   :  { %v193_v13 = vmul.f32 %v381_v9, %v191_v8 }
 0x195   :  { %v195_v21 = vsel %vm194_vm1, %v191_v8, %v193_v13 }
 0x196   :  { %v198_v23 = vsel %vm196_vm2, %v197_v18, %v195_v21 }
 0x197   :  { %v199_v26 = vadd.f32 1e-05, %v198_v23 }
 0x199   :  { %382 = vrcp.f32 %v199_v26 }
 0x1a3   :  { %v383_v59 = vpop.eup %382 }
 0x1a4   :  { %v208_v60 = vrot.slane %v383_v59, %v558_v36 }
 0x1a6   :  { %v210_v63 = vmul.f32 %v208_v60, %v561_v40  ;;  %v211_v0 = vmul.f32 %v208_v60, %v563_v41 }
 0x1a8   :  { %v281_v4 = vmul.f32 %v261_v61, %v210_v63  ;;  %v282_v6 = vmul.f32 %v278_v62, %v211_v0 }
 0x1aa   :  { %v352_v7 = vadd.f32 %v332_v1, %v281_v4  ;;  %v353_v8 = vadd.f32 %v349_v2, %v282_v6 }
 0x1ac   :  { %354 = vst [vmem:[#allocation8] sm:$0xff] %v352_v7  ;;  %355 = vst [vmem:[#allocation8 + $0x8] sm:$0xff] %v353_v8 }
 0x1ad   :  { %461 = shalt.err (!%p458_p0)
}
 0x1ae   :  { %s462_s23 = scalar_lea.hbm %s615_s3, 256 }
 0x1af   :  { %p463_p1 = scmp.ne.s32.totalorder %s615_s3, %s462_s23  ;;  %p466_p2 = scmp.lt.u32.totalorder %s462_s23, %s615_s3 }
 0x1b1   :  { %p468_p3 = pnand %p466_p2, %p463_p1 }
 0x1b3   :  { %471 = shalt.err (!%p468_p3)
}
 0x1b4   :  { %365 = dma.vmem_to_hbm [thread:$0]  %s363_s19, 256, %s615_s3, [#allocation4]  }
 0x1b5   :  { %476 = dma.done.wait [#allocation4], 256  }
 0x1b6   :  { %477 = vsyncadd [#allocation4], 4294967040 }
 0x1b7   :  { %369 = vsyncpa [#allocation3], 1 }
 0x1b8   :  { %370 = vsyncpa [#allocation6], 1 }
 0x1b9   :  { %371 = vsyncpa [#allocation4], 1 }

</bundles_post_ra>
